<compile_context>
chip_gen: v5e
topology: v5e:2x2
jax: 0.10.0
libtpu: 0.0.40
codegen_flags: <defaults>
</compile_context>

<pallas_src>
import jax
import jax.numpy as jnp
from jax.experimental import pallas as pl
from jax.experimental.pallas import tpu as pltpu


def _mlp_kernel(x_ref, w1_ref, b1_ref, w2_ref, b2_ref, w3_ref, b3_ref, o_ref):
    # Cast the streamed x tile in-register (no extra HBM pass in the wrapper).
    x = x_ref[...].astype(w1_ref.dtype)
    # lin1 + relu   (MXU dot, f32 accumulate; biases stay f32)
    h1 = jnp.dot(x, w1_ref[...], preferred_element_type=jnp.float32)
    h1 = jnp.maximum(h1 + b1_ref[...], 0.0)
    # lin2 + relu   (cast activation back to weight dtype to keep the MXU in bf16)
    h2 = jnp.dot(h1.astype(w2_ref.dtype), w2_ref[...],
                 preferred_element_type=jnp.float32)
    h2 = jnp.maximum(h2 + b2_ref[...], 0.0)
    # lin3 (lane-padded to 128 columns; pad biases are -1e30)
    logits = jnp.dot(h2.astype(w3_ref.dtype), w3_ref[...],
                     preferred_element_type=jnp.float32)
    logits = logits + b3_ref[...]
    # log_softmax along dim=1, kept in f32 (pad lanes contribute exp(-huge)=0).
    m = jnp.max(logits, axis=1, keepdims=True)
    shifted = logits - m
    lse = jnp.log(jnp.sum(jnp.exp(shifted), axis=1, keepdims=True))
    o_ref[...] = (shifted - lse).astype(o_ref.dtype)


def _round_up(x, m):
    return ((x + m - 1) // m) * m


def simple_nn_forward(data, params, *, compute_dtype=jnp.bfloat16,
                      out_dtype=jnp.bfloat16, block_b=2048):
    """data: any shape flattenable to (-1, 784); params: dict of weights/biases."""
    x = data.reshape(-1, 784)          # reshape only; dtype untouched (no HBM pass)
    B, D_in = x.shape

    w1 = params["w1"].astype(compute_dtype)
    w2 = params["w2"].astype(compute_dtype)
    w3 = params["w3"].astype(compute_dtype)
    b1 = params["b1"].astype(jnp.float32).reshape(1, -1)
    b2 = params["b2"].astype(jnp.float32).reshape(1, -1)
    b3 = params["b3"].astype(jnp.float32).reshape(1, -1)
    D_h, D_h2, D_out = w1.shape[1], w2.shape[1], w3.shape[1]

    # Lane-dense output slab: pad the D_out columns up to a multiple of 128.
    # Pad biases are -1e30; they vanish in the f32 log-sum-exp and the wrapper
    # slices them off before returning.
    D_pad = _round_up(D_out, 128)
    if D_pad != D_out:
        w3 = jnp.pad(w3, ((0, 0), (0, D_pad - D_out)))
        b3 = jnp.pad(b3, ((0, 0), (0, D_pad - D_out)), constant_values=-1e30)

    # Batch tile: multiple of 8, clamped so the grid has >= 2 steps whenever
    # possible (feeds both v7x TensorCores through the "parallel" axis).
    if B <= 8:
        TB = B                                       # single block == full dim
    else:
        TB = min(_round_up(block_b, 8), _round_up(-(-B // 2), 8))
    # Partial boundary block instead of jnp.pad: out-of-bounds rows of the last
    # tile may compute garbage, but they only land in output rows Pallas masks
    # off on writeback, and the wrapper never returns them.
    grid = (pl.cdiv(B, TB),)

    const2 = lambda i: (0, 0)

    itemsize_x = x.dtype.itemsize
    itemsize_w = jnp.dtype(compute_dtype).itemsize
    itemsize_o = jnp.dtype(out_dtype).itemsize

    flops = 2 * B * (D_in * D_h + D_h * D_h2 + D_h2 * D_pad)
    bytes_accessed = (
        x.size * itemsize_x
        + B * D_pad * itemsize_o
        + (w1.size + w2.size + w3.size) * itemsize_w
        + (b1.size + b2.size + b3.size) * 4
    )

    # VMEM budget: x/out double-buffered, weights double-buffered (tiny), plus
    # f32 in-kernel temporaries.  Capped at 64 MiB so it also fits a v7x TC.
    vmem_est = (
        2 * TB * D_in * itemsize_x
        + 2 * TB * D_pad * itemsize_o
        + 2 * (w1.size + w2.size + w3.size) * itemsize_w
        + 2 * (b1.size + b2.size + b3.size) * 4
        + TB * (D_in + D_h + D_h2 + 2 * D_pad) * 4
    )
    vmem_limit = int(min(64 << 20, max(32 << 20, vmem_est + (16 << 20))))

    out = pl.pallas_call(
        _mlp_kernel,
        out_shape=jax.ShapeDtypeStruct((B, D_pad), out_dtype),
        grid_spec=pltpu.PrefetchScalarGridSpec(
            num_scalar_prefetch=0,
            grid=grid,
            in_specs=[
                pl.BlockSpec((TB, D_in), lambda i: (i, 0)),   # x: streamed per tile
                pl.BlockSpec((D_in, D_h), const2),            # weights: VMEM-resident
                pl.BlockSpec((1, D_h), const2),
                pl.BlockSpec((D_h, D_h2), const2),
                pl.BlockSpec((1, D_h2), const2),
                pl.BlockSpec((D_h2, D_pad), const2),
                pl.BlockSpec((1, D_pad), const2),
            ],
            out_specs=pl.BlockSpec((TB, D_pad), lambda i: (i, 0)),
        ),
        compiler_params=pltpu.CompilerParams(
            dimension_semantics=("parallel",),   # shards batch tiles across TCs on v7x
            vmem_limit_bytes=vmem_limit,
        ),
        cost_estimate=pl.CostEstimate(
            flops=flops,
            transcendentals=B * D_pad,
            bytes_accessed=bytes_accessed,
        ),
    )(x, w1, b1, w2, b2, w3, b3)

    return out[:, :D_out]


def init_params(key, D_in=784, D_h=128, D_h2=64, D_out=10):
    """Deterministic synthetic init (nn.Linear-like uniform fan-in scaling)."""
    ks = jax.random.split(key, 6)

    def lin(kw, kb, fan_in, fan_out):
        bound = 1.0 / jnp.sqrt(fan_in)
        w = jax.random.uniform(kw, (fan_in, fan_out), jnp.float32, -bound, bound)
        b = jax.random.uniform(kb, (1, fan_out), jnp.float32, -bound, bound)
        return w, b

    w1, b1 = lin(ks[0], ks[1], D_in, D_h)
    w2, b2 = lin(ks[2], ks[3], D_h, D_h2)
    w3, b3 = lin(ks[4], ks[5], D_h2, D_out)
    return {"w1": w1, "b1": b1, "w2": w2, "b2": b2, "w3": w3, "b3": b3}


def _reference_forward(data, params):
    x = data.reshape(-1, 784).astype(jnp.float32)
    h1 = jnp.maximum(x @ params["w1"] + params["b1"], 0.0)
    h2 = jnp.maximum(h1 @ params["w2"] + params["b2"], 0.0)
    logits = h2 @ params["w3"] + params["b3"]
    return jax.nn.log_softmax(logits, axis=1)


if __name__ == "__main__":
    key = jax.random.PRNGKey(0)
    k_data, k_params = jax.random.split(key)

    # MNIST-like NCHW input: (batch=2, 1, 28, 28) -> view(-1, 784)
    data = jax.random.normal(k_data, (2, 1, 28, 28), dtype=jnp.float32)
    params = init_params(k_params, D_in=784, D_h=128, D_h2=64, D_out=10)
    ref = _reference_forward(data, params)

    # f32 compute + f32 output: tight check against the f32 reference.
    out_f32 = jax.block_until_ready(
        simple_nn_forward(data, params,
                          compute_dtype=jnp.float32, out_dtype=jnp.float32))
    assert out_f32.shape == (2, 10)
    assert jnp.allclose(out_f32, ref, atol=1e-4, rtol=1e-4)

    # Default fast path (bf16 compute, bf16 output slab, f32 x cast in-kernel).
    out_bf16 = jax.block_until_ready(simple_nn_forward(data, params))
    assert out_bf16.shape == (2, 10)
    assert jnp.allclose(out_bf16.astype(jnp.float32), ref, atol=5e-2, rtol=5e-2)

    # bf16 activations from the producer: kernel streams 1568 B/row from HBM.
    out_bf16_in = jax.block_until_ready(
        simple_nn_forward(data.astype(jnp.bfloat16), params))
    assert out_bf16_in.shape == (2, 10)
    assert jnp.allclose(out_bf16_in.astype(jnp.float32), ref, atol=5e-2, rtol=5e-2)

    # Multi-tile path with a partial boundary block (200 % 64 != 0, no jnp.pad).
    data2 = jax.random.normal(k_data, (200, 1, 28, 28), dtype=jnp.float32)
    ref2 = _reference_forward(data2, params)
    out2 = jax.block_until_ready(simple_nn_forward(data2, params, block_b=64))
    assert out2.shape == (200, 10)
    assert jnp.allclose(out2.astype(jnp.float32), ref2, atol=5e-2, rtol=5e-2)

    print("KERNEL_OK")
</pallas_src>

<mosaic_0001>
module attributes {stable_mosaic.version = 11 : i64} {
  func.func @_mlp_kernel(%arg0: i32, %arg1: memref<2x784xf32, #tpu.memory_space<vmem>>, %arg2: memref<784x128xf32, #tpu.memory_space<vmem>>, %arg3: memref<1x128xf32, #tpu.memory_space<vmem>>, %arg4: memref<128x64xf32, #tpu.memory_space<vmem>>, %arg5: memref<1x64xf32, #tpu.memory_space<vmem>>, %arg6: memref<64x128xf32, #tpu.memory_space<vmem>>, %arg7: memref<1x128xf32, #tpu.memory_space<vmem>>, %arg8: memref<2x128xf32, #tpu.memory_space<vmem>>) attributes {dimension_semantics = [#tpu.dimension_semantics<parallel>], iteration_bounds = array<i64: 1>, scalar_prefetch = 0 : i64, scratch_operands = 0 : i64, tpu.core_type = #tpu.core_type<tc>, window_params = [{transform_indices = @transform_0, window_bounds = array<i64: 2, 784>}, {pipeline_mode = #tpu.pipeline_mode<synchronous>, transform_indices = @transform_1, window_bounds = array<i64: 784, 128>}, {pipeline_mode = #tpu.pipeline_mode<synchronous>, transform_indices = @transform_2, window_bounds = array<i64: 1, 128>}, {pipeline_mode = #tpu.pipeline_mode<synchronous>, transform_indices = @transform_3, window_bounds = array<i64: 128, 64>}, {pipeline_mode = #tpu.pipeline_mode<synchronous>, transform_indices = @transform_4, window_bounds = array<i64: 1, 64>}, {pipeline_mode = #tpu.pipeline_mode<synchronous>, transform_indices = @transform_5, window_bounds = array<i64: 64, 128>}, {pipeline_mode = #tpu.pipeline_mode<synchronous>, transform_indices = @transform_6, window_bounds = array<i64: 1, 128>}, {transform_indices = @transform_7, window_bounds = array<i64: 2, 128>}]} {
    %c0 = arith.constant 0 : index
    %c0_0 = arith.constant 0 : index
    %0 = vector.load %arg1[%c0, %c0_0] : memref<2x784xf32, #tpu.memory_space<vmem>>, vector<2x784xf32>
    %c0_1 = arith.constant 0 : index
    %c0_2 = arith.constant 0 : index
    %1 = vector.load %arg2[%c0_1, %c0_2] : memref<784x128xf32, #tpu.memory_space<vmem>>, vector<784x128xf32>
    %cst = arith.constant dense<0.000000e+00> : vector<2x128xf32>
    %2 = tpu.matmul %0, %1, %cst {dimension_numbers = #tpu.dot_dimension_numbers<[1], [0], [0], [1], [0, 0, 1, 1], [], []>} : vector<2x784xf32>, vector<784x128xf32>, vector<2x128xf32> -> vector<2x128xf32>
    %c0_3 = arith.constant 0 : index
    %c0_4 = arith.constant 0 : index
    %3 = vector.load %arg3[%c0_3, %c0_4] : memref<1x128xf32, #tpu.memory_space<vmem>>, vector<1x128xf32>
    %4 = vector.broadcast %3 : vector<1x128xf32> to vector<2x128xf32>
    %5 = arith.addf %2, %4 : vector<2x128xf32>
    %cst_5 = arith.constant 0.000000e+00 : f32
    %6 = vector.broadcast %cst_5 : f32 to vector<2x128xf32>
    %7 = arith.maximumf %5, %6 : vector<2x128xf32>
    %c0_6 = arith.constant 0 : index
    %c0_7 = arith.constant 0 : index
    %8 = vector.load %arg4[%c0_6, %c0_7] : memref<128x64xf32, #tpu.memory_space<vmem>>, vector<128x64xf32>
    %cst_8 = arith.constant dense<0.000000e+00> : vector<2x64xf32>
    %9 = tpu.matmul %7, %8, %cst_8 {dimension_numbers = #tpu.dot_dimension_numbers<[1], [0], [0], [1], [0, 0, 1, 1], [], []>} : vector<2x128xf32>, vector<128x64xf32>, vector<2x64xf32> -> vector<2x64xf32>
    %c0_9 = arith.constant 0 : index
    %c0_10 = arith.constant 0 : index
    %10 = vector.load %arg5[%c0_9, %c0_10] : memref<1x64xf32, #tpu.memory_space<vmem>>, vector<1x64xf32>
    %11 = vector.broadcast %10 : vector<1x64xf32> to vector<2x64xf32>
    %12 = arith.addf %9, %11 : vector<2x64xf32>
    %cst_11 = arith.constant 0.000000e+00 : f32
    %13 = vector.broadcast %cst_11 : f32 to vector<2x64xf32>
    %14 = arith.maximumf %12, %13 : vector<2x64xf32>
    %c0_12 = arith.constant 0 : index
    %c0_13 = arith.constant 0 : index
    %15 = vector.load %arg6[%c0_12, %c0_13] : memref<64x128xf32, #tpu.memory_space<vmem>>, vector<64x128xf32>
    %cst_14 = arith.constant dense<0.000000e+00> : vector<2x128xf32>
    %16 = tpu.matmul %14, %15, %cst_14 {dimension_numbers = #tpu.dot_dimension_numbers<[1], [0], [0], [1], [0, 0, 1, 1], [], []>} : vector<2x64xf32>, vector<64x128xf32>, vector<2x128xf32> -> vector<2x128xf32>
    %c0_15 = arith.constant 0 : index
    %c0_16 = arith.constant 0 : index
    %17 = vector.load %arg7[%c0_15, %c0_16] : memref<1x128xf32, #tpu.memory_space<vmem>>, vector<1x128xf32>
    %18 = vector.broadcast %17 : vector<1x128xf32> to vector<2x128xf32>
    %19 = arith.addf %16, %18 : vector<2x128xf32>
    %cst_17 = arith.constant dense<0xFF800000> : vector<2xf32>
    %20 = vector.multi_reduction <maximumf>, %19, %cst_17 [1] : vector<2x128xf32> to vector<2xf32>
    %21 = vector.shape_cast %20 : vector<2xf32> to vector<2x1xf32>
    %22 = vector.broadcast %21 : vector<2x1xf32> to vector<2x128xf32>
    %23 = arith.subf %19, %22 : vector<2x128xf32>
    %24 = math.exp %23 : vector<2x128xf32>
    %cst_18 = arith.constant dense<0.000000e+00> : vector<2xf32>
    %25 = vector.multi_reduction <add>, %24, %cst_18 [1] : vector<2x128xf32> to vector<2xf32>
    %26 = vector.shape_cast %25 : vector<2xf32> to vector<2x1xf32>
    %27 = math.log %26 : vector<2x1xf32>
    %28 = vector.broadcast %27 : vector<2x1xf32> to vector<2x128xf32>
    %29 = arith.subf %23, %28 : vector<2x128xf32>
    %c0_19 = arith.constant 0 : index
    %c0_20 = arith.constant 0 : index
    %30 = vector.load %arg8[%c0_19, %c0_20] : memref<2x128xf32, #tpu.memory_space<vmem>>, vector<2x128xf32>
    tpu.vector_store %arg8[%c0_19, %c0_20], %29 {strides = array<i32>} : memref<2x128xf32, #tpu.memory_space<vmem>>, vector<2x128xf32>,
    return
  }
  func.func @transform_0(%arg0: i32) -> (i32, i32) {
    %c0_i32 = arith.constant 0 : i32
    %c0_i32_0 = arith.constant 0 : i32
    return %arg0, %c0_i32 : i32, i32
  }
  func.func @transform_1(%arg0: i32) -> (i32, i32) {
    %c0_i32 = arith.constant 0 : i32
    %c0_i32_0 = arith.constant 0 : i32
    %c0_i32_1 = arith.constant 0 : i32
    return %c0_i32, %c0_i32_0 : i32, i32
  }
  func.func @transform_2(%arg0: i32) -> (i32, i32) {
    %c0_i32 = arith.constant 0 : i32
    %c0_i32_0 = arith.constant 0 : i32
    %c0_i32_1 = arith.constant 0 : i32
    return %c0_i32, %c0_i32_0 : i32, i32
  }
  func.func @transform_3(%arg0: i32) -> (i32, i32) {
    %c0_i32 = arith.constant 0 : i32
    %c0_i32_0 = arith.constant 0 : i32
    %c0_i32_1 = arith.constant 0 : i32
    return %c0_i32, %c0_i32_0 : i32, i32
  }
  func.func @transform_4(%arg0: i32) -> (i32, i32) {
    %c0_i32 = arith.constant 0 : i32
    %c0_i32_0 = arith.constant 0 : i32
    %c0_i32_1 = arith.constant 0 : i32
    return %c0_i32, %c0_i32_0 : i32, i32
  }
  func.func @transform_5(%arg0: i32) -> (i32, i32) {
    %c0_i32 = arith.constant 0 : i32
    %c0_i32_0 = arith.constant 0 : i32
    %c0_i32_1 = arith.constant 0 : i32
    return %c0_i32, %c0_i32_0 : i32, i32
  }
  func.func @transform_6(%arg0: i32) -> (i32, i32) {
    %c0_i32 = arith.constant 0 : i32
    %c0_i32_0 = arith.constant 0 : i32
    %c0_i32_1 = arith.constant 0 : i32
    return %c0_i32, %c0_i32_0 : i32, i32
  }
  func.func @transform_7(%arg0: i32) -> (i32, i32) {
    %c0_i32 = arith.constant 0 : i32
    %c0_i32_0 = arith.constant 0 : i32
    return %arg0, %c0_i32 : i32, i32
  }
}

</mosaic_0001>

<bundles_post_ra>
// kernel: tpu_custom_call.1
= control target key start
LH: loop header
LB: loop body
LE: loop exit
PB: predicated region body
PF: predicated region fallthrough
CT: control target
= control target key end

     0   :  { %12 = vsyncpa [#allocation3], 0  ;;  %s619_s0 = inlined_call_operand.vmem [shape: f32[2,784], index: 0, kind: input, shape index: {}]   ;;  %s620_s1 = inlined_call_operand.hbm [shape: f32[784,128], index: 1, kind: input, shape index: {}]   ;;  %s621_s2 = inlined_call_operand.vmem [shape: f32[1,128], index: 2, kind: input, shape index: {}]   ;;  %s622_s3 = inlined_call_operand.vmem [shape: f32[128,64], index: 3, kind: input, shape index: {}]   ;;  %s623_s4 = inlined_call_operand.vmem [shape: f32[1,64], index: 4, kind: input, shape index: {}]   ;;  %s624_s5 = inlined_call_operand.vmem [shape: f32[64,128], index: 5, kind: input, shape index: {}]   ;;  %s625_s6 = inlined_call_operand.vmem [shape: f32[1,128], index: 6, kind: input, shape index: {}]   ;;  %s626_s7 = inlined_call_operand.hbm [shape: f32[2,128], index: 7, kind: output, shape index: {}]  }
   0x1   :  { %13 = vsyncpa [#allocation4], 0  ;;  %s20_s26 = sshll.u32 %s620_s1, 4  ;;  %s482_s27 = smov [#allocation2]   ;;  %s21_s26 = int_to_ptr.hbm [resolvable:$true] %s20_s26 }
   0x2   :  { %s22_s28 = sshll.u32 %s482_s27, 4  ;;  %s483_s29 = smov 128   ;;  %s23_s28 = int_to_ptr.vmem [resolvable:$true] %s22_s28 }
   0x3   :  { %s484_s30 = smov 8  }
   0x4   :  { %28 = dma.hbm_to_vmem [thread:$0]  %s21_s26, 12544, %s23_s28, [#allocation3], %s483_s29, %s483_s29, %s484_s30  }
   0x5   :  { %478 = dma.done.wait [#allocation3], 12544  }
   0x6   :  { %479 = vsyncadd [#allocation3], 4294954752  ;;  %v60_v0 = vld [vmem:[#allocation2 + $0x78] sm:$0xff]  ;;  %v59_v1 = vld [vmem:[#allocation2 + $0x70] sm:$0xff]  ;;  %vm165_vm0 = vcmask 130048   ;;  %vm362_vm1 = vcmask 523264  }
   0x7   :  { %v76_v2 = vld [vmem:[#allocation2 + $0xf8] sm:$0xff]  ;;  %168 = vmatpush.msra.mxu0 %v60_v0  ;;  %v75_v3 = vld [vmem:[#allocation2 + $0xf0] sm:$0xff]  ;;  %v58_v4 = vld [vmem:[#allocation2 + $0x68] sm:$0xff]  ;;  %vm386_vm2 = vcmask 1041408  }
   0x8   :  { %188 = vmatpush.msra.mxu1 %v76_v2  ;;  %v74_v5 = vld [vmem:[#allocation2 + $0xe8] sm:$0xff]  ;;  %v57_v6 = vld [vmem:[#allocation2 + $0x60] sm:$0xff]  ;;  %v56_v8 = vld [vmem:[#allocation2 + $0x58] sm:$0xff] }
   0x9   :  { %169 = vmatpush.msra.mxu0 %v59_v1  ;;  %v73_v7 = vld [vmem:[#allocation2 + $0xe0] sm:$0xff]  ;;  %v72_v9 = vld [vmem:[#allocation2 + $0xd8] sm:$0xff]  ;;  %v55_v10 = vld [vmem:[#allocation2 + $0x50] sm:$0xff] }
   0xa   :  { %189 = vmatpush.msra.mxu1 %v75_v3  ;;  %v92_v11 = vld [vmem:[#allocation2 + $0x178] sm:$0xff]  ;;  %v71_v12 = vld [vmem:[#allocation2 + $0xd0] sm:$0xff]  ;;  %v90_v15 = vld [vmem:[#allocation2 + $0x168] sm:$0xff] }
   0xb   :  { %170 = vmatpush.msra.mxu0 %v58_v4  ;;  %208 = vmatpush.msra.mxu2 %v92_v11  ;;  %v91_v13 = vld [vmem:[#allocation2 + $0x170] sm:$0xff]  ;;  %v108_v14 = vld [vmem:[#allocation2 + $0x1f8] sm:$0xff]  ;;  %v54_v17 = vld [vmem:[#allocation2 + $0x48] sm:$0xff] }
   0xc   :  { %190 = vmatpush.msra.mxu1 %v74_v5  ;;  %v107_v16 = vld [vmem:[#allocation2 + $0x1f0] sm:$0xff]  ;;  %v70_v18 = vld [vmem:[#allocation2 + $0xc8] sm:$0xff]  ;;  %228 = vmatpush.msra.mxu3 %v108_v14  ;;  %v89_v19 = vld [vmem:[#allocation2 + $0x160] sm:$0xff] }
   0xd   :  { %171 = vmatpush.msra.mxu0 %v57_v6  ;;  %209 = vmatpush.msra.mxu2 %v91_v13  ;;  %v106_v20 = vld [vmem:[#allocation2 + $0x1e8] sm:$0xff]  ;;  %v53_v21 = vld [vmem:[#allocation2 + $0x40] sm:$0xff]  ;;  %v88_v23 = vld [vmem:[#allocation2 + $0x158] sm:$0xff] }
   0xe   :  { %191 = vmatpush.msra.mxu1 %v73_v7  ;;  %v69_v22 = vld [vmem:[#allocation2 + $0xc0] sm:$0xff]  ;;  %229 = vmatpush.msra.mxu3 %v107_v16  ;;  %v52_v25 = vld [vmem:[#allocation2 + $0x38] sm:$0xff]  ;;  %v87_v27 = vld [vmem:[#allocation2 + $0x150] sm:$0xff] }
   0xf   :  { %172 = vmatpush.msra.mxu0 %v56_v8  ;;  %210 = vmatpush.msra.mxu2 %v90_v15  ;;  %v105_v24 = vld [vmem:[#allocation2 + $0x1e0] sm:$0xff]  ;;  %v68_v26 = vld [vmem:[#allocation2 + $0xb8] sm:$0xff]  ;;  %v51_v29 = vld [vmem:[#allocation2 + $0x30] sm:$0xff] }
  0x10   :  { %192 = vmatpush.msra.mxu1 %v72_v9  ;;  %230 = vmatpush.msra.mxu3 %v106_v20  ;;  %v104_v28 = vld [vmem:[#allocation2 + $0x1d8] sm:$0xff]  ;;  %v67_v30 = vld [vmem:[#allocation2 + $0xb0] sm:$0xff]  ;;  %v86_v31 = vld [vmem:[#allocation2 + $0x148] sm:$0xff] }
  0x11   :  { %173 = vmatpush.msra.mxu0 %v55_v10  ;;  %211 = vmatpush.msra.mxu2 %v89_v19  ;;  %v103_v32 = vld [vmem:[#allocation2 + $0x1d0] sm:$0xff]  ;;  %v50_v33 = vld [vmem:[#allocation2 + $0x28] sm:$0xff]  ;;  %v85_v35 = vld [vmem:[#allocation2 + $0x140] sm:$0xff] }
  0x12   :  { %193 = vmatpush.msra.mxu1 %v71_v12  ;;  %231 = vmatpush.msra.mxu3 %v105_v24  ;;  %v66_v34 = vld [vmem:[#allocation2 + $0xa8] sm:$0xff]  ;;  %v49_v37 = vld [vmem:[#allocation2 + $0x20] sm:$0xff]  ;;  %v84_v39 = vld [vmem:[#allocation2 + $0x138] sm:$0xff] }
  0x13   :  { %174 = vmatpush.msra.mxu0 %v54_v17  ;;  %212 = vmatpush.msra.mxu2 %v88_v23  ;;  %v102_v36 = vld [vmem:[#allocation2 + $0x1c8] sm:$0xff]  ;;  %v65_v38 = vld [vmem:[#allocation2 + $0xa0] sm:$0xff]  ;;  %v48_v41 = vld [vmem:[#allocation2 + $0x18] sm:$0xff] }
  0x14   :  { %194 = vmatpush.msra.mxu1 %v70_v18  ;;  %232 = vmatpush.msra.mxu3 %v104_v28  ;;  %v101_v40 = vld [vmem:[#allocation2 + $0x1c0] sm:$0xff]  ;;  %v64_v42 = vld [vmem:[#allocation2 + $0x98] sm:$0xff]  ;;  %v83_v43 = vld [vmem:[#allocation2 + $0x130] sm:$0xff] }
  0x15   :  { %175 = vmatpush.msra.mxu0 %v53_v21  ;;  %213 = vmatpush.msra.mxu2 %v87_v27  ;;  %v100_v44 = vld [vmem:[#allocation2 + $0x1b8] sm:$0xff]  ;;  %v47_v45 = vld [vmem:[#allocation2 + $0x10] sm:$0xff]  ;;  %v82_v47 = vld [vmem:[#allocation2 + $0x128] sm:$0xff] }
  0x16   :  { %195 = vmatpush.msra.mxu1 %v69_v22  ;;  %233 = vmatpush.msra.mxu3 %v103_v32  ;;  %v63_v46 = vld [vmem:[#allocation2 + $0x90] sm:$0xff]  ;;  %v46_v49 = vld [vmem:[#allocation2 + $0x8] sm:$0xff]  ;;  %v81_v51 = vld [vmem:[#allocation2 + $0x120] sm:$0xff] }
  0x17   :  { %176 = vmatpush.msra.mxu0 %v52_v25  ;;  %214 = vmatpush.msra.mxu2 %v86_v31  ;;  %v99_v48 = vld [vmem:[#allocation2 + $0x1b0] sm:$0xff]  ;;  %v62_v50 = vld [vmem:[#allocation2 + $0x88] sm:$0xff]  ;;  %v45_v53 = vld [vmem:[#allocation2] sm:$0xff] }
  0x18   :  { %196 = vmatpush.msra.mxu1 %v68_v26  ;;  %234 = vmatpush.msra.mxu3 %v102_v36  ;;  %v98_v52 = vld [vmem:[#allocation2 + $0x1a8] sm:$0xff]  ;;  %v61_v54 = vld [vmem:[#allocation2 + $0x80] sm:$0xff]  ;;  %v43_v55 = vld [vmem:[%s619_s0] sm:$0xff] }
  0x19   :  { %177 = vmatpush.msra.mxu0 %v51_v29  ;;  %215 = vmatpush.msra.mxu2 %v85_v35  ;;  %v124_v56 = vld [vmem:[#allocation2 + $0x278] sm:$0xff]  ;;  %149 = vst [vmem:[#allocation1] ss:$4 sm:$0xff] %v43_v55  ;;  %v97_v59 = vld [vmem:[#allocation2 + $0x1a0] sm:$0xff]  ;;  %v123_v60 = vld [vmem:[#allocation2 + $0x270] sm:$0xff] }
  0x1a   :  { %197 = vmatpush.msra.mxu1 %v67_v30  ;;  %235 = vmatpush.msra.mxu3 %v101_v40  ;;  %v140_v57 = vld [vmem:[#allocation2 + $0x2f8] sm:$0xff]  ;;  %v139_v61 = vld [vmem:[#allocation2 + $0x2f0] sm:$0xff]  ;;  %v44_v0 = vld [vmem:[%s619_s0 + $0x8] sm:$0x3f] }
  0x1b   :  { %178 = vmatpush.msra.mxu0 %v50_v33  ;;  %216 = vmatpush.msra.mxu2 %v84_v39  ;;  %v80_v58 = vld [vmem:[#allocation2 + $0x118] sm:$0xff]  ;;  %v79_v62 = vld [vmem:[#allocation2 + $0x110] sm:$0xff]  ;;  %v122_v1 = vld [vmem:[#allocation2 + $0x268] sm:$0xff]  ;;  %151 = vst [vmem:[#allocation1 + $0x20] ss:$4 sm:$0xff] %v44_v0 }
  0x1c   :  { %198 = vmatpush.msra.mxu1 %v66_v34  ;;  %236 = vmatpush.msra.mxu3 %v100_v44  ;;  %v96_v63 = vld [vmem:[#allocation2 + $0x198] sm:$0xff]  ;;  %v138_v2 = vld [vmem:[#allocation2 + $0x2e8] sm:$0xff]  ;;  %v95_v4 = vld [vmem:[#allocation2 + $0x190] sm:$0xff] }
  0x1d   :  { %179 = vmatpush.msra.mxu0 %v49_v37  ;;  %217 = vmatpush.msra.mxu2 %v83_v43  ;;  %v78_v3 = vld [vmem:[#allocation2 + $0x108] sm:$0xff]  ;;  %v121_v5 = vld [vmem:[#allocation2 + $0x260] sm:$0xff]  ;;  %v120_v9 = vld [vmem:[#allocation2 + $0x258] sm:$0xff] }
  0x1e   :  { %199 = vmatpush.msra.mxu1 %v65_v38  ;;  %237 = vmatpush.msra.mxu3 %v99_v48  ;;  %v137_v6 = vld [vmem:[#allocation2 + $0x2e0] sm:$0xff]  ;;  %v94_v8 = vld [vmem:[#allocation2 + $0x188] sm:$0xff]  ;;  %v136_v10 = vld [vmem:[#allocation2 + $0x2d8] sm:$0xff] }
  0x1f   :  { %180 = vmatpush.msra.mxu0 %v48_v41  ;;  %218 = vmatpush.msra.mxu2 %v82_v47  ;;  %v77_v7 = vld [vmem:[#allocation2 + $0x100] sm:$0xff]  ;;  %v119_v13 = vld [vmem:[#allocation2 + $0x250] sm:$0xff]  ;;  %v142_v15 = vld [vmem:[#allocation2 + $0x308] sm:$0xff] }
  0x20   :  { %200 = vmatpush.msra.mxu1 %v64_v42  ;;  %238 = vmatpush.msra.mxu3 %v98_v52  ;;  %v154_v11 = vld.sshfl [vmem:[#allocation1 + $0x10] sm:$0xff pattern:$0x73625140]  ;;  %v93_v12 = vld [vmem:[#allocation2 + $0x180] sm:$0xff]  ;;  %v135_v14 = vld [vmem:[#allocation2 + $0x2d0] sm:$0xff] }
  0x21   :  { %181 = vmatpush.msra.mxu0 %v47_v45  ;;  %219 = vmatpush.msra.mxu2 %v81_v51  ;;  %v152_v16 = vld.sshfl [vmem:[#allocation1] sm:$0xff pattern:$0x73625140]  ;;  %v118_v17 = vld [vmem:[#allocation2 + $0x248] sm:$0xff]  ;;  %v117_v21 = vld [vmem:[#allocation2 + $0x240] sm:$0xff] }
  0x22   :  { %201 = vmatpush.msra.mxu1 %v63_v46  ;;  %239 = vmatpush.msra.mxu3 %v97_v59  ;;  %v134_v18 = vld [vmem:[#allocation2 + $0x2c8] sm:$0xff]  ;;  %v155_v19 = vld.sshfl [vmem:[#allocation1 + $0x18] sm:$0xff pattern:$0x73625140]  ;;  %v133_v22 = vld [vmem:[#allocation2 + $0x2c0] sm:$0xff] }
  0x23   :  { %182 = vmatpush.msra.mxu0 %v46_v49  ;;  %220 = vmatpush.msra.mxu2 %v80_v58  ;;  %v153_v20 = vld.sshfl [vmem:[#allocation1 + $0x8] sm:$0xff pattern:$0x73625140]  ;;  %v324_v24 = vld [vmem:[%s622_s3 + $0x78] sm:$0xff]  ;;  %v116_v25 = vld [vmem:[#allocation2 + $0x238] sm:$0xff] }
  0x24   :  { %202 = vmatpush.msra.mxu1 %v62_v50  ;;  %240 = vmatpush.msra.mxu3 %v96_v63  ;;  %v141_v23 = vld [vmem:[#allocation2 + $0x300] sm:$0xff]  ;;  %v132_v26 = vld [vmem:[#allocation2 + $0x2b8] sm:$0xff]  ;;  %v158_v27 = vld.sshfl [vmem:[#allocation1 + $0x30] sm:$0xff pattern:$0x73625140] }
  0x25   :  { %183 = vmatpush.msra.mxu0 %v45_v53  ;;  %221 = vmatpush.msra.mxu2 %v79_v62  ;;  %v323_v28 = vld [vmem:[%s622_s3 + $0x70] sm:$0xff]  ;;  %v115_v29 = vld [vmem:[#allocation2 + $0x230] sm:$0xff]  ;;  %v322_v31 = vld [vmem:[%s622_s3 + $0x68] sm:$0xff] }
  0x26   :  { %203 = vmatpush.msra.mxu1 %v61_v54  ;;  %241 = vmatpush.msra.mxu3 %v95_v4  ;;  %v131_v30 = vld [vmem:[#allocation2 + $0x2b0] sm:$0xff]  ;;  %v114_v32 = vld [vmem:[#allocation2 + $0x228] sm:$0xff]  ;;  %v321_v34 = vld [vmem:[%s622_s3 + $0x60] sm:$0xff] }
  0x27   :  { %248 = vmatpush.msrb.mxu0 %v124_v56  ;;  %222 = vmatpush.msra.mxu2 %v78_v3  ;;  %v130_v33 = vld [vmem:[#allocation2 + $0x2a8] sm:$0xff]  ;;  %v113_v35 = vld [vmem:[#allocation2 + $0x220] sm:$0xff]  ;;  %v320_v37 = vld [vmem:[%s622_s3 + $0x58] sm:$0xff] }
  0x28   :  { %268 = vmatpush.msrb.mxu1 %v140_v57  ;;  %242 = vmatpush.msra.mxu3 %v94_v8  ;;  %v129_v36 = vld [vmem:[#allocation2 + $0x2a0] sm:$0xff]  ;;  %v112_v38 = vld [vmem:[#allocation2 + $0x218] sm:$0xff]  ;;  %v319_v40 = vld [vmem:[%s622_s3 + $0x50] sm:$0xff] }
  0x29   :  { %249 = vmatpush.msrb.mxu0 %v123_v60  ;;  %223 = vmatpush.msra.mxu2 %v77_v7  ;;  %v128_v39 = vld [vmem:[#allocation2 + $0x298] sm:$0xff]  ;;  %v111_v41 = vld [vmem:[#allocation2 + $0x210] sm:$0xff]  ;;  %v318_v43 = vld [vmem:[%s622_s3 + $0x48] sm:$0xff] }
  0x2a   :  { %269 = vmatpush.msrb.mxu1 %v139_v61  ;;  %224 = vmatmul.f32.vlgmr.msra.gmra.mxu2 %v154_v11  ;;  %v127_v42 = vld [vmem:[#allocation2 + $0x290] sm:$0xff]  ;;  %v110_v44 = vld [vmem:[#allocation2 + $0x208] sm:$0xff]  ;;  %v109_v46 = vld [vmem:[#allocation2 + $0x200] sm:$0xff] }
  0x2b   :  { %250 = vmatpush.msrb.mxu0 %v122_v1  ;;  %243 = vmatpush.msra.mxu3 %v93_v12  ;;  %v126_v45 = vld [vmem:[#allocation2 + $0x288] sm:$0xff]  ;;  %v125_v47 = vld [vmem:[#allocation2 + $0x280] sm:$0xff]  ;;  %v156_v48 = vld.sshfl [vmem:[#allocation1 + $0x20] sm:$0xff pattern:$0x73625140] }
  0x2c   :  { %270 = vmatpush.msrb.mxu1 %v138_v2  ;;  %302 = vmatpush.msrb.mxu2 %v142_v15  ;;  %v157_v49 = vld.sshfl [vmem:[#allocation1 + $0x28] sm:$0xff pattern:$0x73625140]  ;;  %v317_v50 = vld [vmem:[%s622_s3 + $0x40] sm:$0xff]  ;;  %v316_v51 = vld [vmem:[%s622_s3 + $0x38] sm:$0xff] }
  0x2d   :  { %251 = vmatpush.msrb.mxu0 %v121_v5  ;;  %244 = vmatmul.f32.vlgmr.msra.gmra.mxu3 %v155_v19  ;;  %v315_v52 = vld [vmem:[%s622_s3 + $0x30] sm:$0xff]  ;;  %v314_v53 = vld [vmem:[%s622_s3 + $0x28] sm:$0xff]  ;;  %v313_v54 = vld [vmem:[%s622_s3 + $0x20] sm:$0xff] }
  0x2e   :  { %271 = vmatpush.msrb.mxu1 %v137_v6  ;;  %184 = vmatmul.f32.vlgmr.msra.gmra.mxu0 %v152_v16  ;;  %v312_v55 = vld [vmem:[%s622_s3 + $0x18] sm:$0xff]  ;;  %v311_v56 = vld [vmem:[%s622_s3 + $0x10] sm:$0xff]  ;;  %v310_v57 = vld [vmem:[%s622_s3 + $0x8] sm:$0xff] }
  0x2f   :  { %252 = vmatpush.msrb.mxu0 %v120_v9  ;;  %204 = vmatmul.f32.vlgmr.msra.gmra.mxu1 %v153_v20  ;;  %v309_v58 = vld [vmem:[%s622_s3] sm:$0xff]  ;;  %v357_v59 = vld [vmem:[%s624_s5 + $0x38] sm:$0xff]  ;;  %v356_v60 = vld [vmem:[%s624_s5 + $0x30] sm:$0xff] }
  0x30   :  { %272 = vmatpush.msrb.mxu1 %v136_v10  ;;  %303 = vmatpush.msrb.mxu2 %v141_v23  ;;  %v355_v61 = vld [vmem:[%s624_s5 + $0x28] sm:$0xff]  ;;  %v423_v62 = vld [vmem:[%s621_s2] ss:$0 sm:$0xff]  ;;  %v353_v1 = vld [vmem:[%s624_s5 + $0x18] sm:$0xff] }
  0x31   :  { %253 = vmatpush.msrb.mxu0 %v119_v13  ;;  %329 = vmatpush.msrb.mxu3 %v324_v24  ;;  %v354_v63 = vld [vmem:[%s624_s5 + $0x20] sm:$0xff]  ;;  %v352_v16 = vld [vmem:[%s624_s5 + $0x10] sm:$0xff] }
  0x32   :  { %273 = vmatpush.msrb.mxu1 %v135_v14  ;;  %417 = vmatmul.msk.f32.vlgmr.msrb.gmra.mxu2 %vm165_vm0, %v158_v27  ;;  %v424_v19 = vld [vmem:[%s623_s4] ss:$0 sm:$0xff]  ;;  %s485_s4 = smov [#allocation5]  }
  0x33   :  { %254 = vmatpush.msrb.mxu0 %v118_v17  ;;  %330 = vmatpush.msrb.mxu3 %v323_v28  ;;  %v351_v17 = vld [vmem:[%s624_s5 + $0x8] sm:$0xff]  ;;  %v425_v23 = vld [vmem:[%s625_s6] ss:$0 sm:$0xff]  ;;  %s407_s6 = sshll.u32 %s626_s7, 4  ;;  %s408_s6 = int_to_ptr.hbm [resolvable:$true] %s407_s6 }
  0x34   :  { %274 = vmatpush.msrb.mxu1 %v134_v18  ;;  %374 = vmatpush.msra.mxu2 %v357_v59  ;;  %v350_v18 = vld [vmem:[%s624_s5] sm:$0xff]  ;;  %s405_s5 = sshll.u32 %s485_s4, 4  ;;  %s406_s5 = int_to_ptr.vmem [resolvable:$true] %s405_s5 }
  0x35   :  { %255 = vmatpush.msrb.mxu0 %v117_v21  ;;  %331 = vmatpush.msrb.mxu3 %v322_v31 }
  0x36   :  { %275 = vmatpush.msrb.mxu1 %v133_v22  ;;  %375 = vmatpush.msra.mxu2 %v356_v60 }
  0x37   :  { %256 = vmatpush.msrb.mxu0 %v116_v25  ;;  %332 = vmatpush.msrb.mxu3 %v321_v34 }
  0x38   :  { %276 = vmatpush.msrb.mxu1 %v132_v26  ;;  %376 = vmatpush.msra.mxu2 %v355_v61 }
  0x39   :  { %257 = vmatpush.msrb.mxu0 %v115_v29  ;;  %333 = vmatpush.msrb.mxu3 %v320_v37 }
  0x3a   :  { %277 = vmatpush.msrb.mxu1 %v131_v30  ;;  %377 = vmatpush.msra.mxu2 %v354_v63 }
  0x3b   :  { %258 = vmatpush.msrb.mxu0 %v114_v32  ;;  %334 = vmatpush.msrb.mxu3 %v319_v40 }
  0x3c   :  { %278 = vmatpush.msrb.mxu1 %v130_v33  ;;  %378 = vmatpush.msra.mxu2 %v353_v1 }
  0x3d   :  { %259 = vmatpush.msrb.mxu0 %v113_v35  ;;  %335 = vmatpush.msrb.mxu3 %v318_v43 }
  0x3e   :  { %279 = vmatpush.msrb.mxu1 %v129_v36  ;;  %379 = vmatpush.msra.mxu2 %v352_v16 }
  0x3f   :  { %260 = vmatpush.msrb.mxu0 %v112_v38  ;;  %336 = vmatpush.msrb.mxu3 %v317_v50 }
  0x40   :  { %280 = vmatpush.msrb.mxu1 %v128_v39  ;;  %380 = vmatpush.msra.mxu2 %v351_v17 }
  0x41   :  { %261 = vmatpush.msrb.mxu0 %v111_v41  ;;  %337 = vmatpush.msrb.mxu3 %v316_v51 }
  0x42   :  { %281 = vmatpush.msrb.mxu1 %v127_v42  ;;  %381 = vmatpush.msra.mxu2 %v350_v18 }
  0x43   :  { %262 = vmatpush.msrb.mxu0 %v110_v44  ;;  %338 = vmatpush.msrb.mxu3 %v315_v52 }
  0x44   :  { %282 = vmatpush.msrb.mxu1 %v126_v45 }
  0x45   :  { %263 = vmatpush.msrb.mxu0 %v109_v46  ;;  %339 = vmatpush.msrb.mxu3 %v314_v53 }
  0x46   :  { %283 = vmatpush.msrb.mxu1 %v125_v47  ;;  %264 = vmatmul.f32.vlgmr.msrb.gmra.mxu0 %v156_v48 }
  0x47   :  { %284 = vmatmul.f32.vlgmr.msrb.gmra.mxu1 %v157_v49  ;;  %340 = vmatpush.msrb.mxu3 %v313_v54 }
  0x49   :  { %341 = vmatpush.msrb.mxu3 %v312_v55 }
  0x4b   :  { %342 = vmatpush.msrb.mxu3 %v311_v56 }
  0x4d   :  { %343 = vmatpush.msrb.mxu3 %v310_v57 }
  0x4f   :  { %344 = vmatpush.msrb.mxu3 %v309_v58 }
  0xab   :  { %v185_v0 = vpop.f32.mrf.mxu0 }
  0xac   :  { %v186_v2 = vadd.f32 %v423_v62, %v185_v0  ;;  %v205_v3 = vpop.f32.mrf.mxu1 }
  0xad   :  { %v225_v5 = vpop.f32.mrf.mxu2 }
  0xae   :  { %v206_v4 = vadd.f32 %v205_v3, %v186_v2 }
  0xb0   :  { %v226_v6 = vadd.f32 %v225_v5, %v206_v4  ;;  %v245_v7 = vpop.f32.mrf.mxu3 }
  0xb2   :  { %v246_v8 = vadd.f32 %v245_v7, %v226_v6 }
  0xb5   :  { %v305_v12 = vpop.f32.mrf.mxu2 }
  0xc3   :  { %v265_v9 = vpop.f32.mrf.mxu0 }
  0xc4   :  { %v285_v10 = vpop.f32.mrf.mxu1  ;;  %v266_v11 = vadd.f32 %v265_v9, %v246_v8 }
  0xc6   :  { %v286_v13 = vadd.f32 %v285_v10, %v266_v11 }
  0xc8   :  { %v306_v14 = vadd.f32 %v305_v12, %v286_v13 }
  0xca   :  { %v308_v15 = vmax.f32 %v306_v14, 0.0 }
  0xcc   :  { %345 = vmatmul.f32.vlgmr.msrb.gmra.mxu3 %v308_v15 }
 0x14f   :  { %v346_v20 = vpop.f32.mrf.mxu3 }
 0x150   :  { %v347_v21 = vadd.f32 %v424_v19, %v346_v20 }
 0x152   :  { %v349_v22 = vmax.f32 %v347_v21, 0.0 }
 0x154   :  { %418 = vmatmul.msk.f32.vlgmr.msra.gmra.mxu2 %vm362_vm1, %v349_v22 }
 0x1d7   :  { %v383_v24 = vpop.f32.mrf.mxu2 }
 0x1d8   :  { %v384_v25 = vadd.f32 %v425_v23, %v383_v24 }
 0x1da   :  { %v387_v26 = vsel %vm386_vm2, %v384_v25, -inf }
 0x1db   :  { %388 = vmax.xlane.f32.xlu0 %v387_v26 }
 0x24e   :  { %v389_v27 = vpop.xlane.xlu0 %388 }
 0x24f   :  { %v390_v28 = vsub.f32 %v384_v25, %v389_v27 }
 0x251   :  { %v391_v29 = vmul.f32 1.442695, %v390_v28 }
 0x253   :  { %426 = vpow2.f32 %v391_v29 }
 0x259   :  { %v427_v30 = vpop.eup %426 }
 0x25a   :  { %v393_v31 = vsel %vm386_vm2, %v427_v30, 0.0 }
 0x25b   :  { %394 = vadd.xlane.f32.xlu0 %v393_v31 }
 0x2ce   :  { %v395_v32 = vpop.xlane.xlu0 %394 }
 0x2cf   :  { %428 = vlog2.f32 %v395_v32 }
 0x2d5   :  { %v429_v33 = vpop.eup %428 }
 0x2d6   :  { %v397_v34 = vmul.f32 0.6931472, %v429_v33 }
 0x2d8   :  { %v398_v35 = vsub.f32 %v390_v28, %v397_v34 }
 0x2da   :  { %399 = vst [vmem:[#allocation5] sm:$0x3] %v398_v35 }
 0x2db   :  { %410 = dma.vmem_to_hbm [thread:$0]  %s406_s5, 32, %s408_s6, [#allocation4]  }
 0x2dc   :  { %480 = dma.done.wait [#allocation4], 32  }
 0x2dd   :  { %481 = vsyncadd [#allocation4], 4294967264 }
 0x2de   :  { %415 = vsyncpa [#allocation3], 1 }
 0x2df   :  { %416 = vsyncpa [#allocation4], 1 }

</bundles_post_ra>
